<compile_context>
chip_gen: v7x
topology: tpu7x:2x2x1
jax: 0.10.0
libtpu: 0.0.40
codegen_flags: <defaults>
</compile_context>

<pallas_src>
import functools

import jax
import jax.numpy as jnp
import numpy as np
from jax.experimental import pallas as pl
from jax.experimental.pallas import tpu as pltpu


def _round_up(a, b):
    return (a + b - 1) // b * b


def _norm_linear_attn_kernel(x_ref, wq_ref, wk_ref, wv_ref, wu_ref, wout_ref,
                             o_ref, kv_ref, *, num_heads, eps, compute_dtype):
    """One grid step == (one batch row, one sequence chunk), all heads."""
    C = x_ref.shape[1]
    H = wq_ref.shape[1]
    d = H // num_heads

    # Reset the carried per-head KV state at the first chunk of each batch row.
    @pl.when(pl.program_id(1) == 0)
    def _():
        kv_ref[...] = jnp.zeros_like(kv_ref)

    xb = x_ref[0]                                                   # (C, E)

    # Projections (MXU), f32 accumulation.  Each panel is lane-aligned.
    q = jnp.dot(xb, wq_ref[...], preferred_element_type=jnp.float32)  # (C, H)
    k = jnp.dot(xb, wk_ref[...], preferred_element_type=jnp.float32)
    v = jnp.dot(xb, wv_ref[...], preferred_element_type=jnp.float32)
    u = jnp.dot(xb, wu_ref[...], preferred_element_type=jnp.float32)

    # SiLU on q, k (VPU + EUP), in f32.
    q = q * jax.nn.sigmoid(q)
    k = k * jax.nn.sigmoid(k)

    # Head-batched layout (num_heads, C, d); cast attention operands to the MXU
    # compute dtype (f32 accumulation is requested on every dot below).
    def to_heads(t):
        return jnp.transpose(t.reshape(C, num_heads, d), (1, 0, 2))

    qh = to_heads(q).astype(compute_dtype)
    kh = to_heads(k).astype(compute_dtype)
    vh = to_heads(v).astype(compute_dtype)

    # ---- intra-chunk part: causal within the chunk (C x C, not N x N) ----
    s = jnp.einsum('hnd,hmd->hnm', qh, kh,
                   preferred_element_type=jnp.float32)              # (nh, C, C)
    row = jax.lax.broadcasted_iota(jnp.int32, (1, C, C), 1)
    col = jax.lax.broadcasted_iota(jnp.int32, (1, C, C), 2)
    s = jnp.where(row >= col, s, 0.0)                               # tril mask
    intra = jnp.einsum('hnm,hmd->hnd', s.astype(compute_dtype), vh,
                       preferred_element_type=jnp.float32)          # (nh, C, d)

    # ---- inter-chunk part: contribution of all previous chunks via KV state ----
    kv = kv_ref[...]                                                # (nh, d, d) f32
    inter = jnp.einsum('hnd,hde->hne', qh, kv.astype(compute_dtype),
                       preferred_element_type=jnp.float32)          # (nh, C, d)

    # Update the carried state with this chunk's keys/values (f32 accumulation).
    kv_ref[...] = kv + jnp.einsum('hnd,hne->hde', kh, vh,
                                  preferred_element_type=jnp.float32)

    # 'b h n d -> b n (h d)'
    attn = jnp.transpose(intra + inter, (1, 0, 2)).reshape(C, H)    # (C, H) f32

    # SimpleRMSNorm over H (no learnable weight), then gate by u.
    attn = attn * jax.lax.rsqrt(jnp.mean(attn * attn, axis=-1, keepdims=True) + eps)
    attn = u * attn

    # Output projection (MXU), f32 accumulation.
    y = jnp.dot(attn, wout_ref[...], preferred_element_type=jnp.float32)  # (C, E)
    o_ref[0] = y.astype(o_ref.dtype)


def norm_linear_attention(x, w_qkvu_t, w_out_t, *, num_heads, eps=1e-6,
                          chunk_size=256, compute_dtype=jnp.bfloat16):
    """x: (B, N, E); w_qkvu_t: (E, 4H); w_out_t: (H, E). Returns (B, N, E)."""
    B, N, E = x.shape
    H4 = w_qkvu_t.shape[1]
    H = H4 // 4
    assert w_out_t.shape == (H, E)
    assert H % num_heads == 0
    d = H // num_heads

    # Split the fused weight into four lane-aligned panels: q | k | v | u.
    w_q = w_qkvu_t[:, 0 * H:1 * H]
    w_k = w_qkvu_t[:, 1 * H:2 * H]
    w_v = w_qkvu_t[:, 2 * H:3 * H]
    w_u = w_qkvu_t[:, 3 * H:4 * H]

    # Sequence chunking (sublane-aligned); pad N so it divides evenly.  Padded
    # rows are zero -> k = v = 0 there, so they cannot corrupt the KV state,
    # and the padded outputs are sliced off below.
    C = _round_up(max(1, min(chunk_size, N)), 8)
    N_pad = _round_up(N, C)
    x_p = x if N_pad == N else jnp.pad(x, ((0, 0), (0, N_pad - N), (0, 0)))
    num_chunks = N_pad // C

    kernel = functools.partial(_norm_linear_attn_kernel,
                               num_heads=num_heads, eps=eps,
                               compute_dtype=compute_dtype)

    itemsize = np.dtype(x.dtype).itemsize
    cost = pl.CostEstimate(
        flops=int(2 * B * N_pad * E * 4 * H        # qkvu projections
                  + 4 * B * N_pad * C * H          # intra-chunk qk^T and (qk)v
                  + 4 * B * N_pad * H * d          # inter-chunk q@KV and KV update
                  + 2 * B * N_pad * H * E),        # output projection
        transcendentals=int(2 * B * N_pad * H + B * N_pad),
        bytes_accessed=int(2 * B * N_pad * E * itemsize
                           + (w_qkvu_t.size + w_out_t.size) * itemsize),
    )

    out = pl.pallas_call(
        kernel,
        out_shape=jax.ShapeDtypeStruct((B, N_pad, E), x.dtype),
        grid_spec=pltpu.PrefetchScalarGridSpec(
            num_scalar_prefetch=0,
            grid=(B, num_chunks),
            in_specs=[
                pl.BlockSpec((1, C, E), lambda b, c: (b, c, 0)),   # x chunk
                pl.BlockSpec((E, H), lambda b, c: (0, 0)),         # W_q (resident)
                pl.BlockSpec((E, H), lambda b, c: (0, 0)),         # W_k
                pl.BlockSpec((E, H), lambda b, c: (0, 0)),         # W_v
                pl.BlockSpec((E, H), lambda b, c: (0, 0)),         # W_u
                pl.BlockSpec((H, E), lambda b, c: (0, 0)),         # W_out
            ],
            out_specs=pl.BlockSpec((1, C, E), lambda b, c: (b, c, 0)),
            scratch_shapes=[pltpu.VMEM((num_heads, d, d), jnp.float32)],  # KV state
        ),
        compiler_params=pltpu.CompilerParams(
            dimension_semantics=("parallel", "arbitrary"),
            vmem_limit_bytes=48 * 1024 * 1024,
        ),
        cost_estimate=cost,
    )(x_p, w_q, w_k, w_v, w_u, w_out_t)

    if N_pad != N:
        out = out[:, :N, :]
    return out


def _reference(x, w_qkvu_t, w_out_t, num_heads, eps=1e-6):
    """Pure-JAX f32 reference mirroring the PyTorch training-path forward."""
    B, N, E = x.shape
    H = w_qkvu_t.shape[1] // 4
    d = H // num_heads
    qkvu = x @ w_qkvu_t                                             # (B, N, 4H)
    q, k, v, u = jnp.split(qkvu, 4, axis=-1)

    def to_heads(t):  # 'b n (h d) -> b h n d'
        return t.reshape(B, N, num_heads, d).transpose(0, 2, 1, 3)

    q, k, v = map(to_heads, (q, k, v))
    q = jax.nn.silu(q)
    k = jax.nn.silu(k)
    mask = jnp.tril(jnp.ones((N, N), jnp.float32))
    energy = jnp.einsum('bhnd,bhmd->bhnm', q, k) * mask
    out = jnp.einsum('bhnm,bhmd->bhnd', energy, v)
    out = out.transpose(0, 2, 1, 3).reshape(B, N, H)                # 'b h n d -> b n (h d)'
    out = out * jax.lax.rsqrt(jnp.mean(out * out, axis=-1, keepdims=True) + eps)
    out = u * out
    return out @ w_out_t


if __name__ == "__main__":
    # Small, deterministic example consistent with the module's shapes.
    batch, seq, embed_dim, hidden_dim, num_heads = 2, 16, 32, 64, 4

    key = jax.random.PRNGKey(0)
    kx, kq, ko = jax.random.split(key, 3)

    x = jax.random.normal(kx, (batch, seq, embed_dim), dtype=jnp.float32)
    # qkvu_proj: nn.Linear(E, 4H, bias=False) -> weight (4H, E); kept transposed (E, 4H).
    w_qkvu_t = jax.random.normal(kq, (embed_dim, 4 * hidden_dim),
                                 dtype=jnp.float32) * (1.0 / np.sqrt(embed_dim))
    # out_proj: nn.Linear(H, E, bias=False) -> weight (E, H); kept transposed (H, E).
    w_out_t = jax.random.normal(ko, (hidden_dim, embed_dim),
                                dtype=jnp.float32) * (1.0 / np.sqrt(hidden_dim))

    ref = _reference(x, w_qkvu_t, w_out_t, num_heads)

    # 1) Exact-arithmetic path (f32 MXU inputs) with chunk_size=8 so the chunked
    #    recurrence (intra + carried KV state, KV reset per batch) is exercised.
    out_f32 = norm_linear_attention(x, w_qkvu_t, w_out_t, num_heads=num_heads,
                                    chunk_size=8, compute_dtype=jnp.float32)
    out_f32 = jax.block_until_ready(out_f32)
    np.testing.assert_allclose(np.asarray(out_f32), np.asarray(ref),
                               rtol=1e-4, atol=1e-4)

    # 2) Padding path: a sequence length that is not a multiple of the chunk.
    x_odd = x[:, :13, :]
    out_odd = norm_linear_attention(x_odd, w_qkvu_t, w_out_t, num_heads=num_heads,
                                    chunk_size=8, compute_dtype=jnp.float32)
    out_odd = jax.block_until_ready(out_odd)
    np.testing.assert_allclose(np.asarray(out_odd),
                               np.asarray(_reference(x_odd, w_qkvu_t, w_out_t, num_heads)),
                               rtol=1e-4, atol=1e-4)

    # 3) Performance path (bf16 MXU inputs, f32 accumulation).  Exactness of the
    #    algorithm is established by (1); this is a loose mixed-precision check.
    out_bf16 = norm_linear_attention(x, w_qkvu_t, w_out_t, num_heads=num_heads,
                                     chunk_size=8, compute_dtype=jnp.bfloat16)
    out_bf16 = jax.block_until_ready(out_bf16)
    np.testing.assert_allclose(np.asarray(out_bf16), np.asarray(ref),
                               rtol=1e-1, atol=1e-1)

    print("KERNEL_OK")
</pallas_src>

<mosaic_0001>
module attributes {stable_mosaic.version = 11 : i64} {
  func.func @_norm_linear_attn_kernel(%arg0: i32, %arg1: i32, %arg2: memref<1x8x32xf32, #tpu.memory_space<vmem>>, %arg3: memref<32x64xf32, #tpu.memory_space<vmem>>, %arg4: memref<32x64xf32, #tpu.memory_space<vmem>>, %arg5: memref<32x64xf32, #tpu.memory_space<vmem>>, %arg6: memref<32x64xf32, #tpu.memory_space<vmem>>, %arg7: memref<64x32xf32, #tpu.memory_space<vmem>>, %arg8: memref<1x8x32xf32, #tpu.memory_space<vmem>>, %arg9: memref<4x16x16xf32, #tpu.memory_space<vmem>>) attributes {dimension_semantics = [#tpu.dimension_semantics<parallel>, #tpu.dimension_semantics<arbitrary>], iteration_bounds = array<i64: 2, 2>, scalar_prefetch = 0 : i64, scratch_operands = 1 : i64, tpu.core_type = #tpu.core_type<tc>, window_params = [{transform_indices = @transform_0, window_bounds = array<i64: 1, 8, 32>}, {pipeline_mode = #tpu.pipeline_mode<synchronous>, transform_indices = @transform_1, window_bounds = array<i64: 32, 64>}, {pipeline_mode = #tpu.pipeline_mode<synchronous>, transform_indices = @transform_2, window_bounds = array<i64: 32, 64>}, {pipeline_mode = #tpu.pipeline_mode<synchronous>, transform_indices = @transform_3, window_bounds = array<i64: 32, 64>}, {pipeline_mode = #tpu.pipeline_mode<synchronous>, transform_indices = @transform_4, window_bounds = array<i64: 32, 64>}, {pipeline_mode = #tpu.pipeline_mode<synchronous>, transform_indices = @transform_5, window_bounds = array<i64: 64, 32>}, {transform_indices = @transform_6, window_bounds = array<i64: 1, 8, 32>}]} {
    %c0_i32 = arith.constant 0 : i32
    %0 = arith.cmpi eq, %arg1, %c0_i32 : i32
    %1 = arith.extui %0 : i1 to i32
    %c0_i32_0 = arith.constant 0 : i32
    %2 = arith.cmpi ne, %1, %c0_i32_0 : i32
    scf.if %2 {
      %cst_36 = arith.constant 0.000000e+00 : f32
      %64 = vector.broadcast %cst_36 : f32 to vector<4x16x16xf32>
      %c0_37 = arith.constant 0 : index
      %c0_38 = arith.constant 0 : index
      %c0_39 = arith.constant 0 : index
      %65 = vector.load %arg9[%c0_37, %c0_38, %c0_39] : memref<4x16x16xf32, #tpu.memory_space<vmem>>, vector<4x16x16xf32>
      tpu.vector_store %arg9[%c0_37, %c0_38, %c0_39], %64 {strides = array<i32>} : memref<4x16x16xf32, #tpu.memory_space<vmem>>, vector<4x16x16xf32>,
    } else {
    }
    %c0 = arith.constant 0 : index
    %c0_1 = arith.constant 0 : index
    %c0_2 = arith.constant 0 : index
    %3 = vector.load %arg2[%c0, %c0_1, %c0_2] : memref<1x8x32xf32, #tpu.memory_space<vmem>>, vector<1x8x32xf32>
    %4 = vector.shape_cast %3 : vector<1x8x32xf32> to vector<8x32xf32>
    %c0_3 = arith.constant 0 : index
    %c0_4 = arith.constant 0 : index
    %5 = vector.load %arg3[%c0_3, %c0_4] : memref<32x64xf32, #tpu.memory_space<vmem>>, vector<32x64xf32>
    %cst = arith.constant dense<0.000000e+00> : vector<8x64xf32>
    %6 = tpu.matmul %4, %5, %cst {dimension_numbers = #tpu.dot_dimension_numbers<[1], [0], [0], [1], [0, 0, 1, 1], [], []>} : vector<8x32xf32>, vector<32x64xf32>, vector<8x64xf32> -> vector<8x64xf32>
    %c0_5 = arith.constant 0 : index
    %c0_6 = arith.constant 0 : index
    %7 = vector.load %arg4[%c0_5, %c0_6] : memref<32x64xf32, #tpu.memory_space<vmem>>, vector<32x64xf32>
    %cst_7 = arith.constant dense<0.000000e+00> : vector<8x64xf32>
    %8 = tpu.matmul %4, %7, %cst_7 {dimension_numbers = #tpu.dot_dimension_numbers<[1], [0], [0], [1], [0, 0, 1, 1], [], []>} : vector<8x32xf32>, vector<32x64xf32>, vector<8x64xf32> -> vector<8x64xf32>
    %c0_8 = arith.constant 0 : index
    %c0_9 = arith.constant 0 : index
    %9 = vector.load %arg5[%c0_8, %c0_9] : memref<32x64xf32, #tpu.memory_space<vmem>>, vector<32x64xf32>
    %cst_10 = arith.constant dense<0.000000e+00> : vector<8x64xf32>
    %10 = tpu.matmul %4, %9, %cst_10 {dimension_numbers = #tpu.dot_dimension_numbers<[1], [0], [0], [1], [0, 0, 1, 1], [], []>} : vector<8x32xf32>, vector<32x64xf32>, vector<8x64xf32> -> vector<8x64xf32>
    %c0_11 = arith.constant 0 : index
    %c0_12 = arith.constant 0 : index
    %11 = vector.load %arg6[%c0_11, %c0_12] : memref<32x64xf32, #tpu.memory_space<vmem>>, vector<32x64xf32>
    %cst_13 = arith.constant dense<0.000000e+00> : vector<8x64xf32>
    %12 = tpu.matmul %4, %11, %cst_13 {dimension_numbers = #tpu.dot_dimension_numbers<[1], [0], [0], [1], [0, 0, 1, 1], [], []>} : vector<8x32xf32>, vector<32x64xf32>, vector<8x64xf32> -> vector<8x64xf32>
    %13 = arith.negf %6 : vector<8x64xf32>
    %14 = math.exp %13 : vector<8x64xf32>
    %cst_14 = arith.constant 1.000000e+00 : f32
    %15 = vector.broadcast %cst_14 : f32 to vector<8x64xf32>
    %16 = arith.addf %15, %14 : vector<8x64xf32>
    %17 = arith.divf %15, %16 : vector<8x64xf32>
    %18 = arith.mulf %6, %17 : vector<8x64xf32>
    %19 = arith.negf %8 : vector<8x64xf32>
    %20 = math.exp %19 : vector<8x64xf32>
    %cst_15 = arith.constant 1.000000e+00 : f32
    %21 = vector.broadcast %cst_15 : f32 to vector<8x64xf32>
    %22 = arith.addf %21, %20 : vector<8x64xf32>
    %23 = arith.divf %21, %22 : vector<8x64xf32>
    %24 = arith.mulf %8, %23 : vector<8x64xf32>
    %25 = vector.shape_cast %18 : vector<8x64xf32> to vector<8x4x16xf32>
    %26 = tpu.transpose %25, [1, 0, 2] : vector<8x4x16xf32> -> vector<4x8x16xf32>
    %27 = vector.shape_cast %24 : vector<8x64xf32> to vector<8x4x16xf32>
    %28 = tpu.transpose %27, [1, 0, 2] : vector<8x4x16xf32> -> vector<4x8x16xf32>
    %29 = vector.shape_cast %10 : vector<8x64xf32> to vector<8x4x16xf32>
    %30 = tpu.transpose %29, [1, 0, 2] : vector<8x4x16xf32> -> vector<4x8x16xf32>
    "tpu.trace_start"() <{level = 10 : i32, message = "hnd,hmd->hnm"}> : () -> ()
    %cst_16 = arith.constant dense<0.000000e+00> : vector<4x8x8xf32>
    %31 = tpu.matmul %26, %28, %cst_16 {dimension_numbers = #tpu.dot_dimension_numbers<[2], [2], [1], [1], [0, 0, 0, 1, 1, 1], [0], [0]>} : vector<4x8x16xf32>, vector<4x8x16xf32>, vector<4x8x8xf32> -> vector<4x8x8xf32>
    "tpu.trace_stop"() : () -> ()
    %32 = tpu.iota {dimensions = array<i32: 1>} : vector<1x8x8xi32>
    %33 = tpu.iota {dimensions = array<i32: 2>} : vector<1x8x8xi32>
    %34 = arith.cmpi sge, %32, %33 : vector<1x8x8xi32>
    %cst_17 = arith.constant 0.000000e+00 : f32
    %35 = vector.shape_cast %34 : vector<1x8x8xi1> to vector<1x8x8xi1>
    %36 = vector.broadcast %35 : vector<1x8x8xi1> to vector<4x8x8xi1>
    %37 = vector.broadcast %cst_17 : f32 to vector<4x8x8xf32>
    %38 = arith.select %36, %31, %37 : vector<4x8x8xi1>, vector<4x8x8xf32>
    "tpu.trace_start"() <{level = 10 : i32, message = "hnm,hmd->hnd"}> : () -> ()
    %cst_18 = arith.constant dense<0.000000e+00> : vector<4x8x16xf32>
    %39 = tpu.matmul %38, %30, %cst_18 {dimension_numbers = #tpu.dot_dimension_numbers<[2], [1], [1], [2], [0, 0, 0, 1, 1, 2], [0], [0]>} : vector<4x8x8xf32>, vector<4x8x16xf32>, vector<4x8x16xf32> -> vector<4x8x16xf32>
    "tpu.trace_stop"() : () -> ()
    %c0_19 = arith.constant 0 : index
    %c0_20 = arith.constant 0 : index
    %c0_21 = arith.constant 0 : index
    %40 = vector.load %arg9[%c0_19, %c0_20, %c0_21] : memref<4x16x16xf32, #tpu.memory_space<vmem>>, vector<4x16x16xf32>
    "tpu.trace_start"() <{level = 10 : i32, message = "hnd,hde->hne"}> : () -> ()
    %cst_22 = arith.constant dense<0.000000e+00> : vector<4x8x16xf32>
    %41 = tpu.matmul %26, %40, %cst_22 {dimension_numbers = #tpu.dot_dimension_numbers<[2], [1], [1], [2], [0, 0, 0, 1, 1, 2], [0], [0]>} : vector<4x8x16xf32>, vector<4x16x16xf32>, vector<4x8x16xf32> -> vector<4x8x16xf32>
    "tpu.trace_stop"() : () -> ()
    "tpu.trace_start"() <{level = 10 : i32, message = "hnd,hne->hde"}> : () -> ()
    %cst_23 = arith.constant dense<0.000000e+00> : vector<4x16x16xf32>
    %42 = tpu.matmul %28, %30, %cst_23 {dimension_numbers = #tpu.dot_dimension_numbers<[1], [1], [2], [2], [0, 0, 0, 2, 1, 2], [0], [0]>} : vector<4x8x16xf32>, vector<4x8x16xf32>, vector<4x16x16xf32> -> vector<4x16x16xf32>
    "tpu.trace_stop"() : () -> ()
    %43 = arith.addf %40, %42 : vector<4x16x16xf32>
    %c0_24 = arith.constant 0 : index
    %c0_25 = arith.constant 0 : index
    %c0_26 = arith.constant 0 : index
    %44 = vector.load %arg9[%c0_24, %c0_25, %c0_26] : memref<4x16x16xf32, #tpu.memory_space<vmem>>, vector<4x16x16xf32>
    tpu.vector_store %arg9[%c0_24, %c0_25, %c0_26], %43 {strides = array<i32>} : memref<4x16x16xf32, #tpu.memory_space<vmem>>, vector<4x16x16xf32>,
    %45 = arith.addf %39, %41 : vector<4x8x16xf32>
    %46 = tpu.transpose %45, [1, 0, 2] : vector<4x8x16xf32> -> vector<8x4x16xf32>
    %47 = vector.shape_cast %46 : vector<8x4x16xf32> to vector<8x64xf32>
    %48 = arith.mulf %47, %47 : vector<8x64xf32>
    %cst_27 = arith.constant dense<0.000000e+00> : vector<8xf32>
    %49 = vector.multi_reduction <add>, %48, %cst_27 [1] : vector<8x64xf32> to vector<8xf32>
    %50 = vector.shape_cast %49 : vector<8xf32> to vector<8x1xf32>
    %cst_28 = arith.constant 6.400000e+01 : f32
    %51 = vector.broadcast %cst_28 : f32 to vector<8x1xf32>
    %52 = arith.divf %50, %51 : vector<8x1xf32>
    %cst_29 = arith.constant 9.99999997E-7 : f32
    %53 = vector.broadcast %cst_29 : f32 to vector<8x1xf32>
    %54 = arith.addf %52, %53 : vector<8x1xf32>
    %55 = math.rsqrt %54 : vector<8x1xf32>
    %56 = vector.broadcast %55 : vector<8x1xf32> to vector<8x64xf32>
    %57 = arith.mulf %47, %56 : vector<8x64xf32>
    %58 = arith.mulf %12, %57 : vector<8x64xf32>
    %c0_30 = arith.constant 0 : index
    %c0_31 = arith.constant 0 : index
    %59 = vector.load %arg7[%c0_30, %c0_31] : memref<64x32xf32, #tpu.memory_space<vmem>>, vector<64x32xf32>
    %cst_32 = arith.constant dense<0.000000e+00> : vector<8x32xf32>
    %60 = tpu.matmul %58, %59, %cst_32 {dimension_numbers = #tpu.dot_dimension_numbers<[1], [0], [0], [1], [0, 0, 1, 1], [], []>} : vector<8x64xf32>, vector<64x32xf32>, vector<8x32xf32> -> vector<8x32xf32>
    %c0_33 = arith.constant 0 : index
    %c0_34 = arith.constant 0 : index
    %c0_35 = arith.constant 0 : index
    %61 = vector.load %arg8[%c0_33, %c0_34, %c0_35] : memref<1x8x32xf32, #tpu.memory_space<vmem>>, vector<1x8x32xf32>
    %62 = vector.shape_cast %61 : vector<1x8x32xf32> to vector<8x32xf32>
    %63 = vector.shape_cast %60 : vector<8x32xf32> to vector<1x8x32xf32>
    tpu.vector_store %arg8[%c0_33, %c0_34, %c0_35], %63 {strides = array<i32>} : memref<1x8x32xf32, #tpu.memory_space<vmem>>, vector<1x8x32xf32>,
    return
  }
  func.func @transform_0(%arg0: i32, %arg1: i32) -> (i32, i32, i32) {
    %c0_i32 = arith.constant 0 : i32
    %c0_i32_0 = arith.constant 0 : i32
    return %arg0, %arg1, %c0_i32 : i32, i32, i32
  }
  func.func @transform_1(%arg0: i32, %arg1: i32) -> (i32, i32) {
    %c0_i32 = arith.constant 0 : i32
    %c0_i32_0 = arith.constant 0 : i32
    %c0_i32_1 = arith.constant 0 : i32
    return %c0_i32, %c0_i32_0 : i32, i32
  }
  func.func @transform_2(%arg0: i32, %arg1: i32) -> (i32, i32) {
    %c0_i32 = arith.constant 0 : i32
    %c0_i32_0 = arith.constant 0 : i32
    %c0_i32_1 = arith.constant 0 : i32
    return %c0_i32, %c0_i32_0 : i32, i32
  }
  func.func @transform_3(%arg0: i32, %arg1: i32) -> (i32, i32) {
    %c0_i32 = arith.constant 0 : i32
    %c0_i32_0 = arith.constant 0 : i32
    %c0_i32_1 = arith.constant 0 : i32
    return %c0_i32, %c0_i32_0 : i32, i32
  }
  func.func @transform_4(%arg0: i32, %arg1: i32) -> (i32, i32) {
    %c0_i32 = arith.constant 0 : i32
    %c0_i32_0 = arith.constant 0 : i32
    %c0_i32_1 = arith.constant 0 : i32
    return %c0_i32, %c0_i32_0 : i32, i32
  }
  func.func @transform_5(%arg0: i32, %arg1: i32) -> (i32, i32) {
    %c0_i32 = arith.constant 0 : i32
    %c0_i32_0 = arith.constant 0 : i32
    %c0_i32_1 = arith.constant 0 : i32
    return %c0_i32, %c0_i32_0 : i32, i32
  }
  func.func @transform_6(%arg0: i32, %arg1: i32) -> (i32, i32, i32) {
    %c0_i32 = arith.constant 0 : i32
    %c0_i32_0 = arith.constant 0 : i32
    return %arg0, %arg1, %c0_i32 : i32, i32, i32
  }
}

</mosaic_0001>

<bundles_post_ra>
// kernel: tpu_custom_call.1
= control target key start
LH: loop header
LB: loop body
LE: loop exit
PB: predicated region body
PF: predicated region fallthrough
CT: control target
= control target key end

     0   :  { %11 = vsyncpa [#allocation4], 0  ;;  %s3957_s0 = inlined_call_operand.vmem [shape: f32[2,16,32], index: 0, kind: input, shape index: {}]   ;;  %s3958_s1 = inlined_call_operand.vmem [shape: f32[32,64], index: 1, kind: input, shape index: {}]   ;;  %s3959_s2 = inlined_call_operand.vmem [shape: f32[32,64], index: 2, kind: input, shape index: {}]   ;;  %s3960_s3 = inlined_call_operand.hbm [shape: f32[32,64], index: 3, kind: input, shape index: {}]   ;;  %s3961_s4 = inlined_call_operand.hbm [shape: f32[32,64], index: 4, kind: input, shape index: {}]   ;;  %s3962_s5 = inlined_call_operand.vmem [shape: f32[64,32], index: 5, kind: input, shape index: {}]   ;;  %s3963_s6 = inlined_call_operand.hbm [shape: f32[2,16,32], index: 6, kind: output, shape index: {}]  }
   0x1   :  { %12 = vsyncpa [#allocation7], 0 }
   0x2   :  { %13 = vsyncpa [#allocation5], 0 }
   0x3   :  { %15 = vsyncpa [#allocation5 + $0x1], 0  ;;  %s3458_s21 = smov 0   ;;  %s3460_s22 = smov 0  }
   0x4   :  { %s3462_s23 = smov 0   ;;  %s3464_s24 = smov 0  }
   0x5   :  { %s3466_s25 = smov 0   ;;  %s3468_s26 = smov 0  }
   0x6   :  { %s3470_s27 = smov 0   ;;  %s3472_s28 = smov 0  }
   0x7 LB: > { %3973 = sst [smem:[#allocation12_spill]] %s3384_s23  ;;  %s2797_s29 = sadd.s32 4294967295, %s3404_s28   ;;  %s3404_s28 = sphi %s3472_s28, %s21_s28   ;;  %s3400_s27 = sphi %s3470_s27, %s3993_s27   ;;  %s3396_s26 = sphi %s3468_s26, %s3992_s26   ;;  %s3392_s25 = sphi %s3466_s25, %s3991_s25   ;;  %s3388_s24 = sphi %s3464_s24, %s3990_s24   ;;  %s3384_s23 = sphi %s3462_s23, %s3989_s23   ;;  %s3380_s22 = sphi %s3460_s22, %s3995_s22   ;;  %s3376_s21 = sphi %s3458_s21, %s3994_s21  }
   0x8   : > { %3974 = sst [smem:[#allocation13_spill]] %s3396_s26  ;;  %s2798_s30 = sadd.s32 4294967294, %s3404_s28  }
   0x9   : > { %3975 = sst [smem:[#allocation14_spill]] %s3400_s27  ;;  %s30_s7 = sadd.s32 1, %s3396_s26 }
   0xa   : > { %s33_s8 = sadd.s32 1, %s3400_s27  ;;  %p31_p0 = scmp.ge.s32.totalorder %s30_s7, 2 }
   0xb   : > { %s175_s9 = sadd.s32 1, %s3384_s23  ;;  %p185_p1 = scmp.ne.s32.totalorder %s3384_s23, %s3380_s22 }
   0xc   : > { %p186_p2 = scmp.eq.s32.totalorder %s2797_s29, 3  ;;  %s3997_s7 = smov (%p31_p0, %s30_s7), 0 }
   0xd   : > { %3976 = sst [smem:[#allocation15_spill]] %s3997_s7  ;;  %s3999_s8 = smov (!%p31_p0, %s33_s8), %s3400_s27 }
   0xe   : > { %s171_s10 = ssub.s32 %s3396_s26, %s3997_s7  ;;  %p3510_p3 = por %p186_p2, %p185_p1 }
   0xf   : > { %p35_p4 = scmp.ge.s32.totalorder %s3999_s8, 2  ;;  %p191_p5 = scmp.ne.s32.totalorder %s3380_s22, %s3376_s21 }
  0x10   : > { %s3977_s11 = scalar_select %p3510_p3, 1, 0 }
  0x11   : > { %p192_p6 = scmp.eq.s32.totalorder %s2798_s30, 3  ;;  %p2799_p7 = scmp.ge.s32.totalorder %s3404_s28, 1 }
  0x12   : > { %s4001_s8 = smov (%p35_p4, %s3999_s8), 0  ;;  %p199_p9 = scmp.lt.s32.totalorder %s3404_s28, 5 }
  0x13   : > { %3978 = sst [smem:[#allocation16_spill]] %s4001_s8  ;;  %p3519_p8 = por %p192_p6, %p191_p5 }
  0x14   : > { %s170_s13 = ssub.s32 %s3400_s27, %s4001_s8  ;;  %p3526_p10 = pnand %p2799_p7, %p199_p9 }
  0x15   : > { %s3979_s12 = scalar_select %p3519_p8, 1, 0 }
  0x16   : > { %s172_s14 = sor.u32 %s171_s10, %s170_s13  ;;  %p3530_p12 = scmp.eq.s32.totalorder %s2797_s29, 0 }
  0x17   : > { %s3980_s15 = scalar_select %p3526_p10, 1, 0 }
  0x18   : > { %p173_p11 = scmp.eq.s32.totalorder %s172_s14, 0  ;;  %p3140_p13 = pneg %p3526_p10 }
  0x19   : > { %s3981_s16 = scalar_select %p3530_p12, 1, 0 }
  0x1a   : > { %s3537_s17 = scalar_select %p173_p11, %s3384_s23, %s175_s9  }
  0x1b   : > { %s3406_s18 = smov [#allocation3]   ;;  %p3541_p0 = pnand %p3530_p12, %p3140_p13 }
  0x1c   : > { %3982 = sst [smem:[#allocation17_spill]] %s3537_s17  ;;  %s217_s19 = sshll.u32 %s3406_s18, 4  ;;  %s218_s19 = int_to_ptr.vmem [resolvable:$true] %s217_s19 }
  0x1d   : > { %s3246_s10 = scalar_lea.hbm %s3960_s3, 512  ;;  %p3248_p2 = pneg %p3541_p0 }
  0x1e   : > { %p3247_p1 = scmp.ne.s32.totalorder %s3960_s3, %s3246_s10  ;;  %p3253_p6 = scmp.lt.u32.totalorder %s3246_s10, %s3960_s3 }
  0x20   : > { %p3249_p4 = pnand %p3248_p2, %p3247_p1 }
  0x22   : > { %p3250_p5 = pneg %p3249_p4 }
  0x24   : > { %p3255_p7 = pnand %p3253_p6, %p3250_p5 }
  0x26   : > { %3258 = shalt.err (!%p3255_p7)
}
  0x27   : > { %s3259_s8 = scalar_lea.vmem %s218_s19, 512  ;;  %p3267_p8 = scmp.lt.s32.totalorder %s218_s19, %s218_s19 }
  0x28   : > { %p3260_p9 = scmp.ne.s32.totalorder %s218_s19, %s3259_s8  ;;  %p3268_p3 = scmp.lt.s32.totalorder %s3259_s8, %s3259_s8 }
  0x2a   : > { %p3262_p11 = pnand %p3260_p9, %p3248_p2  ;;  %p3269_p12 = por %p3268_p3, %p3267_p8 }
  0x2c   : > { %p3263_p13 = pneg %p3262_p11 }
  0x2e   : > { %p3270_p10 = pnand %p3269_p12, %p3263_p13 }
  0x30   : > { %3273 = shalt.err (!%p3270_p10)
}
  0x31   : > { %s3407_s30 = smov 128   ;;  %s3408_s29 = smov 8  }
  0x32   : > { %3143 = dma.hbm_to_vmem [thread:$0]  (!%p3541_p0), %s3960_s3, 512, %s218_s19, [#allocation4], %s3407_s30, %s3407_s30, %s3408_s29  }
  0x33   : > { %s3409_s14 = smov [#allocation6]   ;;  %s3274_s27 = scalar_lea.hbm %s3961_s4, 512 }
  0x34   : > { %s230_s9 = sshll.u32 %s3409_s14, 4  ;;  %p3275_p3 = scmp.ne.s32.totalorder %s3961_s4, %s3274_s27  ;;  %s231_s9 = int_to_ptr.vmem [resolvable:$true] %s230_s9 }
  0x35   : > { %p3281_p12 = scmp.lt.u32.totalorder %s3274_s27, %s3961_s4 }
  0x36   : > { %p3277_p8 = pnand %p3275_p3, %p3248_p2 }
  0x38   : > { %p3278_p10 = pneg %p3277_p8 }
  0x3a   : > { %p3283_p1 = pnand %p3281_p12, %p3278_p10 }
  0x3c   : > { %3286 = shalt.err (!%p3283_p1)
}
  0x3d   : > { %s3287_s19 = scalar_lea.vmem %s231_s9, 512  ;;  %p3295_p7 = scmp.lt.s32.totalorder %s231_s9, %s231_s9 }
  0x3e   : > { %p3288_p4 = scmp.ne.s32.totalorder %s231_s9, %s3287_s19  ;;  %p3296_p9 = scmp.lt.s32.totalorder %s3287_s19, %s3287_s19 }
  0x40   : > { %p3290_p5 = pnand %p3288_p4, %p3248_p2  ;;  %p3297_p11 = por %p3296_p9, %p3295_p7 }
  0x42   : > { %p3291_p6 = pneg %p3290_p5 }
  0x44   : > { %p3298_p13 = pnand %p3297_p11, %p3291_p6 }
  0x46   : > { %3301 = shalt.err (!%p3298_p13)
}
  0x47   : > { %3146 = dma.hbm_to_vmem [thread:$0]  (!%p3541_p0), %s3961_s4, 512, %s231_s9, [#allocation7], %s3407_s30, %s3407_s30, %s3408_s29  }
  0x48   : > { %p3984_p3 = scmp.ne.s32.totalorder %s3980_s15, 0 }
  0x49   : > { %p3985_p8 = scmp.ne.s32.totalorder (!%p3984_p3), %s3981_s16, 0 }
  0x4a   : > { %260 = sbr.rel (%p3984_p3) target bundleno = 1455 (0x5af), region = 44 }
  0x51   : > { %3363 = dma.done.wait (%p3985_p8), [#allocation4], 512  }
  0x52   : > { %3365 = vsyncadd (%p3985_p8), [#allocation4], 4294966784 }
  0x53   : > { %3367 = dma.done.wait (%p3985_p8), [#allocation7], 512  }
  0x54   : > { %3369 = vsyncadd (%p3985_p8), [#allocation7], 4294966784  ;;  %s294_s23 = sand.u32 1, %s3380_s22   ;;  %p297_p0 = scmp.lt.s32.totalorder %s3392_s25, 1 }
  0x55   : > { %s3601_s27 = sshll.u32 %s294_s23, 3  ;;  %p299_p2 = scmp.lt.s32.totalorder %s3388_s24, 1 }
  0x56   : > { %s298_s15 = scalar_select %p297_p0, %s3392_s25, 1 }
  0x57   : > { %s300_s17 = scalar_select %p299_p2, %s3388_s24, 1 }
  0x58   : > { %s2807_s20 = sshll.u32 %s298_s15, 1  ;;  %s296_s14 = scalar_lea.vmem [#allocation8], %s3601_s27 }
  0x59   : > { %s302_s30 = sadd.s32 %s2807_s20, %s300_s17  ;;  %p2809_p10 = scmp.ne.s32.totalorder %s3388_s24, 0 }
  0x5a   : > { %s2808_s29 = sshll.u32 %s302_s30, 3  ;;  %vm309_vm0 = vcmask (!%p2809_p10), 130048   ;;  %v3410_v0 = vmov (!%p2809_p10), 0.0  }
  0x5b   : > { %s3609_s13 = scalar_lea.vmem %s3957_s0, %s2808_s29  ;;  %308 = sbr.rel (%p2809_p10) target bundleno = 98 (0x62), region = 56  ;;  %310 = vst.msk [vmem:[#allocation2] sm:$0xff] (!%p2809_p10), %vm309_vm0, %v3410_v0  ;;  %311 = vst.msk [vmem:[#allocation2 + $0x8] sm:$0xff] (!%p2809_p10), %vm309_vm0, %v3410_v0 }
  0x5c   : > { %312 = vst.msk [vmem:[#allocation2 + $0x10] sm:$0xff] (!%p2809_p10), %vm309_vm0, %v3410_v0  ;;  %313 = vst.msk [vmem:[#allocation2 + $0x18] sm:$0xff] (!%p2809_p10), %vm309_vm0, %v3410_v0 }
  0x5d   : > { %314 = vst.msk [vmem:[#allocation2 + $0x20] sm:$0xff] (!%p2809_p10), %vm309_vm0, %v3410_v0  ;;  %315 = vst.msk [vmem:[#allocation2 + $0x28] sm:$0xff] (!%p2809_p10), %vm309_vm0, %v3410_v0 }
  0x5e   : > { %316 = vst.msk [vmem:[#allocation2 + $0x30] sm:$0xff] (!%p2809_p10), %vm309_vm0, %v3410_v0  ;;  %317 = vst.msk [vmem:[#allocation2 + $0x38] sm:$0xff] (!%p2809_p10), %vm309_vm0, %v3410_v0 }
  0x62 PF: > { %v319_v1 = vld [vmem:[%s3958_s1] sm:$0xff]  ;;  %v320_v2 = vld [vmem:[%s3958_s1 + $0x8] sm:$0xff]  ;;  %v321_v3 = vld [vmem:[%s3958_s1 + $0x10] sm:$0xff]  ;;  %v3411_v4 = vmov 0.0|0.0   ;;  %vm3412_vm1 = vmmov 0   ;;  %v3413_v7 = vmov 0.0   ;;  %v648_v46 = vlaneseq }
  0x63   : > { %3074 = vmatprep.subr.bf16.mxu1 %v3411_v4  ;;  %v3075_v5 = vpack.c.bf16 %v320_v2, %v319_v1  ;;  %v322_v6 = vld [vmem:[%s3958_s1 + $0x18] sm:$0xff]  ;;  %2931 = vmatprep.mubr.msk.f32.mxu1 %vm3412_vm1, %v3413_v7  ;;  %v471_v9 = vld [vmem:[#allocation3] sm:$0xff]  ;;  %v472_v10 = vld [vmem:[#allocation3 + $0x8] sm:$0xff]  ;;  %vm323_vm2 = vcmask 261120   ;;  %s3415_s19 = smov 80   ;;  %s3416_s26 = smov 96  }
  0x64   : > { %3086 = vmatprep.subr.bf16.mxu0 %v3411_v4  ;;  %2953 = vmatprep.mubr.msk.f32.mxu0 %vm3412_vm1, %v3413_v7  ;;  %v3078_v8 = vpack.c.bf16 %v322_v6, %v321_v3  ;;  %v473_v11 = vld [vmem:[#allocation3 + $0x10] sm:$0xff]  ;;  %v397_v12 = vld [vmem:[%s3959_s2] sm:$0xff]  ;;  %v398_v13 = vld [vmem:[%s3959_s2 + $0x8] sm:$0xff]  ;;  %v3087_v14 = vpack.c.bf16 %v472_v10, %v471_v9  ;;  %v3417_v44 = vmov 1983009808   ;;  %v3675_v51 = vshrl.u32 %v648_v46, 7 }
  0x65   : > { %3076 = vmatpush3.bf16.msra.mxu1 %v3075_v5  ;;  %v474_v15 = vld [vmem:[#allocation3 + $0x18] sm:$0xff]  ;;  %v318_v17 = vld [vmem:[%s3609_s13] sm:$0xff]  ;;  %v3081_v18 = vpack.c.bf16 %v398_v13, %v397_v12  ;;  %v399_v19 = vld [vmem:[%s3959_s2 + $0x10] sm:$0xff]  ;;  %s3414_s13 = smov 112   ;;  %v646_v45 = vunpack.c.l.s4 %v3417_v44  ;;  %v3418_v48 = vmov 1934713408  }
  0x66   : > { %3077 = vmatprep.subr.bf16.mxu1 %v3411_v4  ;;  %3088 = vmatpush3.bf16.msra.mxu0 %v3087_v14  ;;  %v3090_v16 = vpack.c.bf16 %v474_v15, %v473_v11  ;;  %v400_v20 = vld [vmem:[%s3959_s2 + $0x18] sm:$0xff]  ;;  %v545_v36 = vld [vmem:[#allocation6] sm:$0xff]  ;;  %v546_v37 = vld [vmem:[#allocation6 + $0x8] sm:$0xff]  ;;  %v678_v49 = vunpack.c.l.s4 %v3418_v48  ;;  %vm1071_vm3 = vcmask 130048   ;;  %vm1707_vm4 = vcmask 64512   ;;  %s3419_s7 = smov 32  }
  0x67   : > { %3089 = vmatprep.subr.bf16.mxu0 %v3411_v4  ;;  %v3084_v21 = vpack.c.bf16 %v400_v20, %v399_v19  ;;  %v3093_v38 = vpack.c.bf16 %v546_v37, %v545_v36  ;;  %v547_v41 = vld [vmem:[#allocation6 + $0x10] sm:$0xff]  ;;  %v548_v42 = vld [vmem:[#allocation6 + $0x18] sm:$0xff]  ;;  %v647_v50 = vunpack.c.0.s8 %v646_v45  ;;  %s3420_s15 = smov 16   ;;  %s3421_s17 = smov 48   ;;  %vm2586_vm6 = vcmask 392192  }
  0x68   : > { %v3096_v43 = vpack.c.bf16 %v548_v42, %v547_v41  ;;  %v679_v54 = vunpack.c.0.s8 %v678_v49  ;;  %vm2589_vm7 = vcmask 523264   ;;  %s2850_s29 = sshll.u32 %s3392_s25, 1  ;;  %s2697_s9 = sshll.u32 %s296_s14, 4  ;;  %s3901_s9 = int_to_ptr.vmem [resolvable:$true] %s2697_s9 }
  0x69   : > { %3079 = vmatpush3.bf16.msra.mxu1 %v3078_v8  ;;  %v3678_v55 = vsub.s32 %v647_v50, %v3675_v51  ;;  %s2693_s16 = sadd.s32 %s3388_s24, %s2850_s29  ;;  %s2682_s24 = scalar_lea.sflag [#allocation5], %s294_s23 }
  0x6a   : > { %3080 = vmatprep.subr.bf16.mxu1 %v3411_v4  ;;  %3091 = vmatpush3.bf16.msra.mxu0 %v3090_v16  ;;  %v3681_v63 = vsub.s32 %v679_v54, %v3675_v51  ;;  %s2851_s10 = sshll.u32 %s2693_s16, 7  ;;  %s3302_s25 = scalar_lea.vmem %s3901_s9, 128 }
  0x6b   : > { %2967 = vmatprep.subr.mxu0 %v3413_v7  ;;  %p3303_p12 = scmp.ne.s32.totalorder %s3901_s9, %s3302_s25  ;;  %p3986_p1 = scmp.ne.s32.totalorder %s3977_s11, 0 }
  0x6c   : > { %2932 = vmatmul.mubr.msk.f32.vlgmr.msra.gmra.mrb[0].mxu1 %vm323_vm2, %v318_v17 }
  0x6d   : > { %3082 = vmatpush3.bf16.msra.mxu1 %v3081_v18  ;;  %2942 = vmatprep.mubr.msk.f32.mxu1 %vm3412_vm1, %v3413_v7  ;;  %p3304_p4 = pnand %p3303_p12, %p3986_p1 }
  0x6e   : > { %3083 = vmatprep.subr.bf16.mxu1 %v3411_v4  ;;  %2954 = vmatmul.mubr.msk.f32.vlgmr.msra.gmra.mrb[0].mxu0 %vm323_vm2, %v318_v17 }
  0x6f   : > { %2969 = vmatprep.mubr.msk.f32.mxu0 %vm3412_vm1, %v3413_v7  ;;  %p3305_p5 = pneg %p3304_p4 }
  0x71   : > { %3085 = vmatpush3.bf16.msra.mxu1 %v3084_v21 }
  0x72   : > { %3092 = vmatprep.subr.bf16.mxu1 %v3411_v4 }
  0x74   : > { %2943 = vmatmul.mubr.msk.f32.vlgmr.msra.gmra.mrb[2].mxu1 %vm323_vm2, %v318_v17 }
  0x75   : > { %2964 = vmatprep.mubr.msk.f32.mxu1 %vm3412_vm1, %v3413_v7  ;;  %3094 = vmatpush3.bf16.msra.mxu1 %v3093_v38 }
  0x76   : > { %3095 = vmatprep.subr.bf16.mxu1 %v3411_v4 }
  0x79   : > { %3097 = vmatpush3.bf16.msra.mxu1 %v3096_v43 }
  0x7a   : > { %2972 = vmatprep.subr.mxu1 %v3413_v7 }
  0x7c   : > { %2965 = vmatmul.mubr.msk.f32.vlgmr.msra.gmra.mrb[4].mxu1 %vm323_vm2, %v318_v17 }
  0x7d   : > { %2974 = vmatprep.mubr.msk.f32.mxu1 %vm3412_vm1, %v3413_v7 }
 0x13f   : > { %v393_v22 = vpop.f32.mrb[0].mxu1 }
 0x140   : > { %v2814_v23 = vmul.f32 -1.442695, %v393_v22  ;;  %v2933_v24 = vpop.f32.mrb[1].mxu1 }
 0x141   : > { %v3659_v25 = vpop.f32.mrb[0].mxu0 }
 0x142   : > { %3236 = vpow2.f32 %v2814_v23  ;;  %v2955_v26 = vpop.f32.mrb[1].mxu0 }
 0x147   : > { %v467_v27 = vpop.f32.mrb[2].mxu1 }
 0x148   : > { %v2815_v28 = vmul.f32 -1.442695, %v467_v27  ;;  %v2944_v29 = vpop.f32.mrb[3].mxu1 }
 0x14a   : > { %3238 = vpow2.f32 %v2815_v28 }
 0x14c   : > { %v3237_v30 = vpop.eup %3236 }
 0x14d   : > { %v622_v31 = vadd.f32 1.0, %v3237_v30 }
 0x14f   : > { %3240 = vrcp.f32 %v622_v31 }
 0x154   : > { %v3239_v32 = vpop.eup %3238 }
 0x155   : > { %v629_v33 = vadd.f32 1.0, %v3239_v32 }
 0x157   : > { %3242 = vrcp.f32 %v629_v33 }
 0x159   : > { %v3241_v34 = vpop.eup %3240 }
 0x15a   : > { %v3661_v35 = vmul.f32 %v3241_v34, %v393_v22 }
 0x15c   : > { %634 = vrot.lane.b32.xlu1 %v3661_v35, %s3414_s13 }
 0x161   : > { %v3243_v39 = vpop.eup %3242 }
 0x162   : > { %v632_v40 = vmul.f32 %v3243_v39, %v467_v27 }
 0x164   : > { %786 = vrot.lane.b32.xlu1 %v632_v40, %s3415_s19  ;;  %780 = vrot.lane.b32.xlu0 %v632_v40, %s3414_s13 }
 0x168   : > { %640 = vrot.lane.b32.xlu1 %v3661_v35, %s3415_s19  ;;  %783 = vrot.lane.b32.xlu0 %v632_v40, %s3416_s26 }
 0x16c   : > { %637 = vrot.lane.b32.xlu0 %v3661_v35, %s3416_s26  ;;  %929 = vrot.lane.b32.xlu1 %v3659_v25, %s3416_s26 }
 0x170   : > { %926 = vrot.lane.b32.xlu0 %v3659_v25, %s3414_s13  ;;  %s3899_s13 = scalar_lea.hbm %s3963_s6, %s2851_s10 }
 0x174   : > { %932 = vrot.lane.b32.xlu0 %v3659_v25, %s3415_s19  ;;  %s3422_s19 = smov [#allocation8]  }
 0x175   : > { %s3306_s26 = sshll.u32 %s3422_s19, 4  ;;  %s3307_s26 = int_to_ptr.vmem [resolvable:$false] %s3306_s26 }
 0x176   : > { %p3309_p6 = scmp.lt.s32.totalorder %s3901_s9, %s3307_s26 }
 0x1ce   : > { %v635_v47 = vpop.permute.xlu1 %634 }
 0x1d6   : > { %v787_v52 = vpop.permute.xlu1 %786  ;;  %v781_v53 = vpop.permute.xlu0 %780 }
 0x1d7   : > { %v805_v56 = vcombine.low %v781_v53, %v787_v52  ;;  %v806_v57 = vcombine.high %v781_v53, %v787_v52 }
 0x1d9   : > { %v813_v0 = vrot.slane %v805_v56, %v3678_v55  ;;  %v820_v1 = vrot.slane %v806_v57, %v3678_v55 }
 0x1da   : > { %v641_v58 = vpop.permute.xlu1 %640  ;;  %v784_v59 = vpop.permute.xlu0 %783 }
 0x1db   : > { %v789_v60 = vcombine.low %v632_v40, %v784_v59  ;;  %v790_v61 = vcombine.high %v632_v40, %v784_v59  ;;  %v659_v62 = vcombine.low %v635_v47, %v641_v58  ;;  %v660_v5 = vcombine.high %v635_v47, %v641_v58 }
 0x1dd   : > { %v797_v2 = vrot.slane %v789_v60, %v3678_v55  ;;  %v804_v3 = vrot.slane %v790_v61, %v3678_v55  ;;  %v667_v13 = vrot.slane %v659_v62, %v3678_v55  ;;  %v674_v20 = vrot.slane %v660_v5, %v3678_v55 }
 0x1de   : > { %v638_v6 = vpop.permute.xlu0 %637  ;;  %v930_v12 = vpop.permute.xlu1 %929 }
 0x1df   : > { %v821_v8 = vcombine.low %v797_v2, %v813_v0  ;;  %v822_v9 = vcombine.high %v797_v2, %v813_v0  ;;  %v837_v10 = vcombine.low %v804_v3, %v820_v1  ;;  %v838_v11 = vcombine.high %v804_v3, %v820_v1 }
 0x1e0   : > { %v643_v14 = vcombine.low %v3661_v35, %v638_v6  ;;  %v644_v15 = vcombine.high %v3661_v35, %v638_v6  ;;  %v935_v23 = vcombine.low %v3659_v25, %v930_v12  ;;  %v936_v45 = vcombine.high %v3659_v25, %v930_v12 }
 0x1e1   : > { %v829_v16 = vrot.slane %v821_v8, %v3681_v63  ;;  %v836_v17 = vrot.slane %v822_v9, %v3681_v63  ;;  %v845_v18 = vrot.slane %v837_v10, %v3681_v63  ;;  %v852_v19 = vrot.slane %v838_v11, %v3681_v63  ;;  %v3718_v9 = vld [vmem:[#allocation2] sm:$0xff]  ;;  %v3720_v10 = vld [vmem:[#allocation2 + $0x8] sm:$0xff] }
 0x1e2   : > { %v651_v21 = vrot.slane %v643_v14, %v3678_v55  ;;  %v658_v22 = vrot.slane %v644_v15, %v3678_v55  ;;  %v927_v33 = vpop.permute.xlu0 %926  ;;  %v943_v56 = vrot.slane %v935_v23, %v3678_v55  ;;  %v950_v1 = vrot.slane %v936_v45, %v3678_v55 }
 0x1e3   : > { %v857_v24 = vcombine.low %v829_v16, %v836_v17  ;;  %v2818_v26 = vcombine.high %v829_v16, %v836_v17  ;;  %v873_v27 = vcombine.low %v845_v18, %v852_v19  ;;  %v2819_v28 = vcombine.high %v845_v18, %v852_v19  ;;  %v3729_v17 = vld [vmem:[#allocation2 + $0x10] sm:$0xff]  ;;  %v3731_v18 = vld [vmem:[#allocation2 + $0x18] sm:$0xff] }
 0x1e4   : > { %v675_v29 = vcombine.low %v651_v21, %v667_v13  ;;  %v676_v30 = vcombine.high %v651_v21, %v667_v13  ;;  %v691_v31 = vcombine.low %v658_v22, %v674_v20  ;;  %v692_v32 = vcombine.high %v658_v22, %v674_v20 }
 0x1e5   : > { %v864_v34 = vrot.slane %v857_v24, %v3678_v55  ;;  %v872_v35 = vrot.slane %v2818_v26, %v3678_v55  ;;  %v880_v36 = vrot.slane %v873_v27, %v3678_v55  ;;  %v888_v37 = vrot.slane %v2819_v28, %v3678_v55 }
 0x1e6   : > { %v683_v38 = vrot.slane %v675_v29, %v3681_v63  ;;  %v690_v39 = vrot.slane %v676_v30, %v3681_v63  ;;  %v699_v40 = vrot.slane %v691_v31, %v3681_v63  ;;  %v706_v41 = vrot.slane %v692_v32, %v3681_v63  ;;  %v933_v25 = vpop.permute.xlu0 %932 }
 0x1e7   : > { %v889_v42 = vcombine.low %v864_v34, %v872_v35  ;;  %v890_v43 = vcombine.high %v864_v34, %v872_v35  ;;  %v905_v44 = vcombine.low %v880_v36, %v888_v37  ;;  %v906_v53 = vcombine.high %v880_v36, %v888_v37  ;;  %v3747_v36 = vld [vmem:[#allocation2 + $0x20] sm:$0xff]  ;;  %v3749_v37 = vld [vmem:[#allocation2 + $0x28] sm:$0xff] }
 0x1e8   : > { %v711_v47 = vcombine.low %v683_v38, %v690_v39  ;;  %v2816_v48 = vcombine.high %v683_v38, %v690_v39  ;;  %v727_v49 = vcombine.low %v699_v40, %v706_v41  ;;  %v2817_v50 = vcombine.high %v699_v40, %v706_v41  ;;  %v3756_v40 = vld [vmem:[#allocation2 + $0x30] sm:$0xff]  ;;  %v3758_v41 = vld [vmem:[#allocation2 + $0x38] sm:$0xff] }
 0x1e9   : > { %v897_v52 = vrot.slane %v889_v42, %v3681_v63  ;;  %v913_v54 = vrot.slane %v905_v44, %v3681_v63  ;;  %v904_v61 = vrot.slane %v890_v43, %v3681_v63  ;;  %v920_v8 = vrot.slane %v906_v53, %v3681_v63 }
 0x1ea   : > { %v718_v57 = vrot.slane %v711_v47, %v3678_v55  ;;  %v726_v58 = vrot.slane %v2816_v48, %v3678_v55  ;;  %v734_v59 = vrot.slane %v727_v49, %v3678_v55  ;;  %v742_v60 = vrot.slane %v2817_v50, %v3678_v55 }
 0x1eb   : > { %v922_v62 = vcombine.high %v897_v52, %v913_v54  ;;  %v921_v0 = vcombine.low %v897_v52, %v913_v54  ;;  %v951_v11 = vcombine.low %v927_v33, %v933_v25  ;;  %v952_v12 = vcombine.high %v927_v33, %v933_v25 }
 0x1ec   : > { %v743_v2 = vcombine.low %v718_v57, %v726_v58  ;;  %v744_v3 = vcombine.high %v718_v57, %v726_v58  ;;  %v759_v5 = vcombine.low %v734_v59, %v742_v60  ;;  %v760_v6 = vcombine.high %v734_v59, %v742_v60 }
 0x1ed   : > { %1789 = vxpose.xlu0.b32.start.end [1/1] (short) (narrow) %v922_v62, 16  ;;  %2973 = vmatpush3.xpose.msk.msra.mxu1 %vm1071_vm3, %v922_v62  ;;  %v959_v19 = vrot.slane %v951_v11, %v3678_v55  ;;  %v966_v20 = vrot.slane %v952_v12, %v3678_v55  ;;  %v3099_v23 = vpack.c.bf16 %v3720_v10, %v3718_v9 }
 0x1ee   : > { %1675 = vxpose.xlu1.b32.start.end [1/1] (short) (narrow) %v921_v0, 16  ;;  %2968 = vmatpush3.xpose.msk.msra.mxu0 %vm1071_vm3, %v921_v0  ;;  %v751_v13 = vrot.slane %v743_v2, %v3681_v63  ;;  %v767_v14 = vrot.slane %v759_v5, %v3681_v63  ;;  %v758_v15 = vrot.slane %v744_v3, %v3681_v63  ;;  %v3789_v3 = vpop.f32.mrb[4].mxu1 }
 0x1ef   : > { %2977 = vmatprep.subr.mxu0 %v3413_v7  ;;  %2982 = vmatprep.subr.mxu1 %v3413_v7  ;;  %v774_v16 = vrot.slane %v760_v6, %v3681_v63  ;;  %v923_v24 = vcombine.low %v904_v61, %v920_v8  ;;  %v924_v26 = vcombine.high %v904_v61, %v920_v8  ;;  %v2966_v5 = vpop.f32.mrb[5].mxu1 }
 0x1f0   : > { %v775_v21 = vcombine.low %v751_v13, %v767_v14  ;;  %v776_v22 = vcombine.high %v751_v13, %v767_v14  ;;  %v967_v27 = vcombine.low %v943_v56, %v959_v19  ;;  %v968_v28 = vcombine.high %v943_v56, %v959_v19 }
 0x1f1   : > { %v3102_v29 = vpack.c.bf16 %v3731_v18, %v3729_v17  ;;  %v983_v30 = vcombine.low %v950_v1, %v966_v20  ;;  %v984_v31 = vcombine.high %v950_v1, %v966_v20  ;;  %v777_v32 = vcombine.low %v758_v15, %v774_v16 }
 0x1f2   : > { %2970 = vmatmul.mubr.msk.f32.vlgmr.msra.gmra.mrb[2].mxu0 %vm1071_vm3, %v775_v21  ;;  %2975 = vmatmul.mubr.msk.f32.vlgmr.msra.gmra.mrb[6].mxu1 %vm1071_vm3, %v776_v22  ;;  %v975_v33 = vrot.slane %v967_v27, %v3681_v63  ;;  %v982_v34 = vrot.slane %v968_v28, %v3681_v63  ;;  %v778_v35 = vcombine.high %v758_v15, %v774_v16  ;;  %v1379_v19 = vand.u32 127, %v648_v46 }
 0x1f3   : > { %2978 = vmatpush3.xpose.msk.msra.mxu0 %vm1071_vm3, %v923_v24  ;;  %2983 = vmatpush3.xpose.msk.msra.mxu1 %vm1071_vm3, %v924_v26  ;;  %v991_v38 = vrot.slane %v983_v30, %v3681_v63  ;;  %v998_v39 = vrot.slane %v984_v31, %v3681_v63  ;;  %v3105_v47 = vpack.c.bf16 %v3749_v37, %v3747_v36 }
 0x1f4   : > { %1902 = vxpose.xlu0.b32.start.end [1/1] (short) (narrow) %v923_v24, 16  ;;  %2979 = vmatprep.mubr.msk.f32.mxu0 %vm3412_vm1, %v3413_v7  ;;  %v1003_v42 = vcombine.low %v975_v33, %v982_v34  ;;  %v2820_v43 = vcombine.high %v975_v33, %v982_v34  ;;  %v3108_v50 = vpack.c.bf16 %v3758_v41, %v3756_v40 }
 0x1f5   : > { %2984 = vmatprep.mubr.msk.f32.mxu1 %vm3412_vm1, %v3413_v7  ;;  %3098 = vmatprep.subr.bf16.mxu0 %v3411_v4  ;;  %v1019_v44 = vcombine.low %v991_v38, %v998_v39  ;;  %v2821_v45 = vcombine.high %v991_v38, %v998_v39  ;;  %vm1380_vm5 = vcmp.ge.s32.totalorder %v3675_v51, %v1379_v19 }
 0x1f6   : > { %2980 = vmatmul.mubr.msk.f32.vlgmr.msra.gmra.mrb[4].mxu0 %vm1071_vm3, %v777_v32  ;;  %2985 = vmatmul.mubr.msk.f32.vlgmr.msra.gmra.mrb[8].mxu1 %vm1071_vm3, %v778_v35  ;;  %v1010_v48 = vrot.slane %v1003_v42, %v3678_v55  ;;  %v1018_v49 = vrot.slane %v2820_v43, %v3678_v55 }
 0x1f7   : > { %3101 = vmatprep.subr.bf16.mxu1 %v3411_v4  ;;  %3100 = vmatpush3.bf16.msra.mxu0 %v3099_v23  ;;  %v1026_v52 = vrot.slane %v1019_v44, %v3678_v55  ;;  %v1034_v53 = vrot.slane %v2821_v45, %v3678_v55 }
 0x1f8   : > { %3103 = vmatpush3.bf16.msra.mxu1 %v3102_v29  ;;  %2991 = vmatprep.mubr.msk.f32.mxu0 %vm3412_vm1, %v3413_v7  ;;  %v1035_v54 = vcombine.low %v1010_v48, %v1018_v49  ;;  %v1036_v56 = vcombine.high %v1010_v48, %v1018_v49 }
 0x1f9   : > { %2015 = vxpose.xlu0.b32.start.end [1/1] (short) (narrow) %v924_v26, 16  ;;  %2998 = vmatprep.mubr.msk.f32.mxu1 %vm3412_vm1, %v3413_v7  ;;  %v1051_v57 = vcombine.low %v1026_v52, %v1034_v53  ;;  %v1052_v58 = vcombine.high %v1026_v52, %v1034_v53 }
 0x1fa   : > { %2992 = vmatmul.mubr.msk.f32.vlgmr.msra.gmra.mrb[6].mxu0 %vm1071_vm3, %v775_v21  ;;  %3104 = vmatprep.subr.bf16.mxu0 %v3411_v4  ;;  %v1043_v59 = vrot.slane %v1035_v54, %v3681_v63  ;;  %v1050_v60 = vrot.slane %v1036_v56, %v3681_v63 }
 0x1fb   : > { %2999 = vmatmul.mubr.msk.f32.vlgmr.msra.gmra.mrb[10].mxu1 %vm1071_vm3, %v776_v22  ;;  %3107 = vmatprep.subr.bf16.mxu1 %v3411_v4  ;;  %v1059_v25 = vrot.slane %v1051_v57, %v3681_v63  ;;  %v1066_v61 = vrot.slane %v1052_v58, %v3681_v63 }
 0x1fc   : > { %3106 = vmatpush3.bf16.msra.mxu0 %v3105_v47  ;;  %3109 = vmatpush3.bf16.msra.mxu1 %v3108_v50 }
 0x1fd   : > { %3005 = vmatprep.mubr.msk.f32.mxu0 %vm3412_vm1, %v3413_v7  ;;  %3012 = vmatprep.mubr.msk.f32.mxu1 %vm3412_vm1, %v3413_v7  ;;  %v1067_v62 = vcombine.low %v1043_v59, %v1059_v25  ;;  %v1068_v0 = vcombine.high %v1043_v59, %v1059_v25  ;;  %v1069_v1 = vcombine.low %v1050_v60, %v1066_v61 }
 0x1fe   : > { %v1070_v2 = vcombine.high %v1050_v60, %v1066_v61 }
 0x1ff   : > { %3006 = vmatmul.mubr.msk.f32.vlgmr.msra.gmra.mrb[8].mxu0 %vm1071_vm3, %v777_v32  ;;  %3013 = vmatmul.mubr.msk.f32.vlgmr.msra.gmra.mrb[12].mxu1 %vm1071_vm3, %v778_v35 }
 0x200   : > { %3015 = vmatprep.subr.mxu0 %v1067_v62  ;;  %3020 = vmatprep.subr.mxu1 %v1068_v0 }
 0x201   : > { %3016 = vmatpush3.msra.mxu0 %v1067_v62  ;;  %3021 = vmatpush3.msra.mxu1 %v1068_v0 }
 0x202   : > { %3025 = vmatprep.subr.mxu0 %v1069_v1  ;;  %3030 = vmatprep.subr.mxu1 %v1070_v2 }
 0x26d   : > { %v1805_v6 = vpop.trf.xlu0 }
 0x26e   : > { %v1691_v8 = vpop.trf.xlu1  ;;  %3022 = vmatprep.mubr.msk.f32.mxu1 %vm1707_vm4, %v1805_v6 }
 0x26f   : > { %3017 = vmatprep.mubr.msk.f32.mxu0 %vm1707_vm4, %v1691_v8 }
 0x271   : > { %v1806_v11 = vpop.trf.xlu0 }
 0x272   : > { %v1692_v12 = vpop.trf.xlu1  ;;  %3023 = vmatmul.mubr.msk.f32.vlgmr.msra.gmra.mrb[14].mxu1 %vm1707_vm4, %v1806_v11 }
 0x273   : > { %3018 = vmatmul.mubr.msk.f32.vlgmr.msra.gmra.mrb[10].mxu0 %vm1707_vm4, %v1692_v12  ;;  %3031 = vmatpush3.msra.mxu1 %v1070_v2 }
 0x274   : > { %3026 = vmatpush3.msra.mxu0 %v1069_v1  ;;  %3040 = vmatprep.subr.mxu1 %v3413_v7 }
 0x275   : > { %v1918_v13 = vpop.trf.xlu0  ;;  %3035 = vmatprep.subr.mxu0 %v3413_v7 }
 0x276   : > { %3027 = vmatprep.mubr.msk.f32.mxu0 %vm1707_vm4, %v1918_v13 }
 0x279   : > { %v1919_v14 = vpop.trf.xlu0 }
 0x27a   : > { %3028 = vmatmul.mubr.msk.f32.vlgmr.msra.gmra.mrb[12].mxu0 %vm1707_vm4, %v1919_v14 }
 0x27b   : > { %3036 = vmatpush3.msra.mxu0 %v1067_v62  ;;  %3037 = vmatprep.mubr.msk.f32.mxu0 %vm3412_vm1, %v3413_v7 }
 0x27c   : > { %3045 = vmatprep.subr.mxu0 %v3413_v7 }
 0x27d   : > { %v2031_v15 = vpop.trf.xlu0 }
 0x27e   : > { %3032 = vmatprep.mubr.msk.f32.mxu1 %vm1707_vm4, %v2031_v15 }
 0x281   : > { %v2032_v16 = vpop.trf.xlu0 }
 0x282   : > { %3033 = vmatmul.mubr.msk.f32.vlgmr.msra.gmra.mrb[16].mxu1 %vm1707_vm4, %v2032_v16 }
 0x283   : > { %3041 = vmatpush3.msra.mxu1 %v1068_v0  ;;  %3042 = vmatprep.mubr.msk.f32.mxu1 %vm3412_vm1, %v3413_v7 }
 0x284   : > { %3050 = vmatprep.subr.mxu1 %v3413_v7 }
 0x2c5   : > { %v1144_v20 = vpop.f32.mrb[2].mxu0  ;;  %v1220_v21 = vpop.f32.mrb[6].mxu1 }
 0x2c6   : > { %v1383_v22 = vsel %vm1380_vm5, %v1144_v20, 0.0  ;;  %v1384_v23 = vsel %vm1380_vm5, %v1220_v21, 0.0  ;;  %v2971_v24 = vpop.f32.mrb[3].mxu0  ;;  %v2976_v26 = vpop.f32.mrb[7].mxu1 }
 0x2c7   : > { %3038 = vmatmul.mubr.msk.f32.vlgmr.msra.gmra.mrb[6].mxu0 %vm1707_vm4, %v1383_v22  ;;  %3043 = vmatmul.mubr.msk.f32.vlgmr.msra.gmra.mrb[10].mxu1 %vm1707_vm4, %v1384_v23 }
 0x2c8   : > { %3046 = vmatpush3.msra.mxu0 %v1069_v1  ;;  %3051 = vmatpush3.msra.mxu1 %v1070_v2 }
 0x2c9   : > { %v1296_v27 = vpop.f32.mrb[4].mxu0  ;;  %v1372_v46 = vpop.f32.mrb[8].mxu1  ;;  %3047 = vmatprep.mubr.msk.f32.mxu0 %vm3412_vm1, %v3413_v7  ;;  %3052 = vmatprep.mubr.msk.f32.mxu1 %vm3412_vm1, %v3413_v7 }
 0x2ca   : > { %v1385_v28 = vsel %vm1380_vm5, %v1296_v27, 0.0  ;;  %v1386_v29 = vsel %vm1380_vm5, %v1372_v46, 0.0  ;;  %v2981_v30 = vpop.f32.mrb[5].mxu0  ;;  %v2986_v31 = vpop.f32.mrb[9].mxu1  ;;  %3110 = vmatprep.subr.bf16.mxu0 %v3411_v4 }
 0x2cb   : > { %3048 = vmatmul.mubr.msk.f32.vlgmr.msra.gmra.mrb[8].mxu0 %vm1707_vm4, %v1385_v28  ;;  %3053 = vmatmul.mubr.msk.f32.vlgmr.msra.gmra.mrb[12].mxu1 %vm1707_vm4, %v1386_v29 }
 0x2cc   : > { %3071 = vmatprep.mubr.msk.f32.mxu0 %vm3412_vm1, %v3413_v7 }
 0x345   : > { %v3024_v32 = vpop.f32.mrb[14].mxu1 }
 0x346   : > { %v2131_v33 = vadd.f32 %v3024_v32, %v3731_v18  ;;  %v1893_v34 = vpop.f32.mrb[15].mxu1  ;;  %v3019_v35 = vpop.f32.mrb[10].mxu0 }
 0x347   : > { %v2130_v38 = vadd.f32 %v1893_v34, %v3729_v17  ;;  %v2129_v51 = vadd.f32 %v3019_v35, %v3720_v10  ;;  %v1780_v39 = vpop.f32.mrb[11].mxu0 }
 0x348   : > { %2139 = vst.msk [vmem:[#allocation2 + $0x18] sm:$0xff] %vm1071_vm3, %v2131_v33  ;;  %v2128_v42 = vadd.f32 %v1780_v39, %v3718_v9  ;;  %v2599_v39 = vld [vmem:[%s3962_s5] sm:$0xff] }
 0x349   : > { %2138 = vst.msk [vmem:[#allocation2 + $0x10] sm:$0xff] %vm1071_vm3, %v2130_v38  ;;  %2137 = vst.msk [vmem:[#allocation2 + $0x8] sm:$0xff] %vm1071_vm3, %v2129_v51 }
 0x34a   : > { %2136 = vst.msk [vmem:[#allocation2] sm:$0xff] %vm1071_vm3, %v2128_v42  ;;  %v2600_v42 = vld [vmem:[%s3962_s5 + $0x8] sm:$0xff] }
 0x34d   : > { %v3029_v7 = vpop.f32.mrb[12].mxu0 }
 0x34e   : > { %v2133_v18 = vadd.f32 %v3029_v7, %v3749_v37  ;;  %v2006_v43 = vpop.f32.mrb[13].mxu0  ;;  %v3111_v7 = vpack.c.bf16 %v2600_v42, %v2599_v39 }
 0x34f   : > { %v2132_v44 = vadd.f32 %v2006_v43, %v3747_v36  ;;  %v2602_v43 = vld [vmem:[%s3962_s5 + $0x18] sm:$0xff] }
 0x350   : > { %2141 = vst.msk [vmem:[#allocation2 + $0x28] sm:$0xff] %vm1071_vm3, %v2133_v18  ;;  %3112 = vmatpush3.bf16.msra.mxu0 %v3111_v7  ;;  %v2601_v18 = vld [vmem:[%s3962_s5 + $0x10] sm:$0xff] }
 0x351   : > { %2140 = vst.msk [vmem:[#allocation2 + $0x20] sm:$0xff] %vm1071_vm3, %v2132_v44  ;;  %3113 = vmatprep.subr.bf16.mxu0 %v3411_v4  ;;  %v3114_v44 = vpack.c.bf16 %v2602_v43, %v2601_v18 }
 0x354   : > { %3115 = vmatpush3.bf16.msra.mxu0 %v3114_v44 }
 0x355   : > { %v3034_v10 = vpop.f32.mrb[16].mxu1  ;;  %3116 = vmatprep.subr.bf16.mxu0 %v3411_v4 }
 0x356   : > { %v2135_v17 = vadd.f32 %v3034_v10, %v3758_v41  ;;  %v2119_v9 = vpop.f32.mrb[17].mxu1  ;;  %v2603_v10 = vld [vmem:[%s3962_s5 + $0x20] sm:$0xff] }
 0x357   : > { %v2134_v45 = vadd.f32 %v2119_v9, %v3756_v40 }
 0x358   : > { %2143 = vst.msk [vmem:[#allocation2 + $0x38] sm:$0xff] %vm1071_vm3, %v2135_v17  ;;  %v2604_v17 = vld [vmem:[%s3962_s5 + $0x28] sm:$0xff] }
 0x359   : > { %2142 = vst.msk [vmem:[#allocation2 + $0x30] sm:$0xff] %vm1071_vm3, %v2134_v45  ;;  %v3117_v9 = vpack.c.bf16 %v2604_v17, %v2603_v10  ;;  %v2605_v45 = vld [vmem:[%s3962_s5 + $0x30] sm:$0xff] }
 0x35b   : > { %3118 = vmatpush3.bf16.msra.mxu0 %v3117_v9 }
 0x35c   : > { %3119 = vmatprep.subr.bf16.mxu0 %v3411_v4 }
 0x39a   : > { %v2213_v47 = vpop.f32.mrb[6].mxu0  ;;  %v2286_v48 = vpop.f32.mrb[10].mxu1 }
 0x39b   : > { %v3039_v37 = vpop.f32.mrb[7].mxu0  ;;  %v3044_v49 = vpop.f32.mrb[11].mxu1 }
 0x39e   : > { %v2359_v50 = vpop.f32.mrb[8].mxu0  ;;  %v2432_v36 = vpop.f32.mrb[12].mxu1 }
 0x39f   : > { %v2436_v52 = vcombine.low %v2213_v47, %v2359_v50  ;;  %v2437_v53 = vcombine.high %v2213_v47, %v2359_v50  ;;  %v2452_v54 = vcombine.low %v2286_v48, %v2432_v36  ;;  %v2453_v56 = vcombine.high %v2286_v48, %v2432_v36  ;;  %v3049_v57 = vpop.f32.mrb[9].mxu0  ;;  %v3054_v58 = vpop.f32.mrb[13].mxu1  ;;  %v2606_v47 = vld [vmem:[%s3962_s5 + $0x38] sm:$0xff] }
 0x3a0   : > { %v3120_v48 = vpack.c.bf16 %v2606_v47, %v2605_v45 }
 0x3a1   : > { %v2444_v41 = vrot.slane %v2436_v52, %v3678_v55  ;;  %v2451_v40 = vrot.slane %v2437_v53, %v3678_v55  ;;  %v2460_v59 = vrot.slane %v2452_v54, %v3678_v55  ;;  %v2467_v60 = vrot.slane %v2453_v56, %v3678_v55 }
 0x3a2   : > { %3121 = vmatpush3.bf16.msra.mxu0 %v3120_v48 }
 0x3a3   : > { %v2468_v25 = vcombine.low %v2444_v41, %v2460_v59  ;;  %v2469_v61 = vcombine.high %v2444_v41, %v2460_v59  ;;  %v2484_v62 = vcombine.low %v2451_v40, %v2467_v60  ;;  %v2485_v0 = vcombine.high %v2451_v40, %v2467_v60 }
 0x3a5   : > { %v2476_v1 = vrot.slane %v2468_v25, %v3681_v63  ;;  %v2483_v2 = vrot.slane %v2469_v61, %v3681_v63  ;;  %v2492_v5 = vrot.slane %v2484_v62, %v3681_v63  ;;  %v2499_v6 = vrot.slane %v2485_v0, %v3681_v63 }
 0x3a7   : > { %v2504_v8 = vcombine.low %v2476_v1, %v2483_v2  ;;  %v2846_v11 = vcombine.high %v2476_v1, %v2483_v2  ;;  %v2520_v12 = vcombine.low %v2492_v5, %v2499_v6  ;;  %v2847_v13 = vcombine.high %v2492_v5, %v2499_v6 }
 0x3a9   : > { %v2511_v14 = vrot.slane %v2504_v8, %v3678_v55  ;;  %v2519_v15 = vrot.slane %v2846_v11, %v3678_v55  ;;  %v2527_v16 = vrot.slane %v2520_v12, %v3678_v55  ;;  %v2535_v19 = vrot.slane %v2847_v13, %v3678_v55 }
 0x3ab   : > { %v2537_v20 = vcombine.high %v2511_v14, %v2519_v15  ;;  %v2553_v21 = vcombine.high %v2527_v16, %v2535_v19  ;;  %v2536_v22 = vcombine.low %v2511_v14, %v2519_v15  ;;  %v2552_v23 = vcombine.low %v2527_v16, %v2535_v19 }
 0x3ad   : > { %v2551_v24 = vrot.slane %v2537_v20, %v3681_v63  ;;  %v2567_v26 = vrot.slane %v2553_v21, %v3681_v63  ;;  %v2544_v27 = vrot.slane %v2536_v22, %v3681_v63  ;;  %v2560_v46 = vrot.slane %v2552_v23, %v3681_v63 }
 0x3af   : > { %v2570_v28 = vcombine.low %v2551_v24, %v2567_v26  ;;  %v2569_v29 = vcombine.high %v2544_v27, %v2560_v46  ;;  %v2571_v30 = vcombine.high %v2551_v24, %v2567_v26  ;;  %v2568_v31 = vcombine.low %v2544_v27, %v2560_v46 }
 0x3b1   : > { %2577 = vrot.lane.b32.xlu0 %v2570_v28, %s3419_s7  ;;  %2573 = vrot.lane.b32.xlu1 %v2569_v29, %s3420_s15  ;;  %s3308_s7 = scalar_lea.vmem %s3307_s26, 256 }
 0x3b2   : > { %p3310_p7 = scmp.lt.s32.totalorder %s3308_s7, %s3302_s25 }
 0x3b4   : > { %p3311_p9 = por %p3310_p7, %p3309_p6 }
 0x3b5   : > { %2581 = vrot.lane.b32.xlu1 %v2571_v30, %s3421_s17 }
 0x3b6   : > { %p3312_p11 = pnand %p3311_p9, %p3305_p5 }
 0x423   : > { %v2574_v55 = vpop.permute.xlu1 %2573  ;;  %v2578_v32 = vpop.permute.xlu0 %2577 }
 0x424   : > { %v2584_v33 = vsel %vm1071_vm3, %v2568_v31, %v2574_v55 }
 0x425   : > { %v2585_v35 = vsel %vm323_vm2, %v2584_v33, %v2578_v32 }
 0x427   : > { %v2582_v34 = vpop.permute.xlu1 %2581 }
 0x428   : > { %v2587_v38 = vsel %vm2586_vm6, %v2585_v35, %v2582_v34 }
 0x429   : > { %v2588_v63 = vmul.f32 %v2587_v38, %v2587_v38 }
 0x42b   : > { %v2590_v51 = vsel %vm2589_vm7, %v2588_v63, 0.0 }
 0x42c   : > { %2591 = vadd.xlane.f32.xlu1 %v2590_v51 }
 0x4b9   : > { %v2592_v37 = vpop.xlane.xlu1 %2591 }
 0x4ba   : > { %v2594_v49 = vmul.f32 0.015625, %v2592_v37 }
 0x4bc   : > { %v2595_v50 = vadd.f32 1e-06, %v2594_v49 }
 0x4be   : > { %3244 = vrsqrt.f32 %v2595_v50 }
 0x4c8   : > { %v3245_v36 = vpop.eup %3244 }
 0x4c9   : > { %v2597_v4 = vmul.f32 %v3245_v36, %v2587_v38 }
 0x4cb   : > { %v2598_v52 = vmul.f32 %v2597_v4, %v3789_v3 }
 0x4cd   : > { %3072 = vmatmul.mubr.msk.f32.vlgmr.msra.gmra.mrb[14].mxu0 %vm2589_vm7, %v2598_v52 }
 0x5a0   : > { %v2676_v53 = vpop.f32.mrb[14].mxu0 }
 0x5a1   : > { %2680 = vst.msk [vmem:[%s296_s14] sm:$0xff] %vm323_vm2, %v2676_v53  ;;  %v3073_v3 = vpop.f32.mrb[15].mxu0 }
 0x5a2   : > { %3315 = shalt.err (!%p3312_p11)
}
 0x5a3   : > { %s3316_s23 = scalar_lea.hbm %s3899_s13, 128  ;;  %s3320_s15 = scalar_lea.hbm %s3963_s6, 512 }
 0x5a4   : > { %p3317_p13 = scmp.ne.s32.totalorder %s3899_s13, %s3316_s23  ;;  %p3321_p0 = scmp.lt.u32.totalorder %s3899_s13, %s3963_s6 }
 0x5a5   : > { %p3322_p2 = scmp.lt.u32.totalorder %s3320_s15, %s3316_s23  ;;  %p3324_p12 = scmp.lt.u32.totalorder %s3316_s23, %s3899_s13 }
 0x5a6   : > { %p3318_p3 = pnand %p3317_p13, %p3986_p1 }
 0x5a7   : > { %p3323_p10 = por %p3322_p2, %p3321_p0 }
 0x5a8   : > { %p3319_p8 = pneg %p3318_p3 }
 0x5a9   : > { %p3325_p4 = por %p3324_p12, %p3323_p10 }
 0x5ab   : > { %p3326_p5 = pnand %p3325_p4, %p3319_p8 }
 0x5ad   : > { %3329 = shalt.err (!%p3326_p5)
}
 0x5ae   : > { %3138 = dma.vmem_to_hbm [thread:$0]  (%p3986_p1), %s3901_s9, 128, %s3899_s13, %s2682_s24  }
 0x5af PF: > { %p3155_p6 = scmp.ge.s32.totalorder %s3404_s28, 2  ;;  %s2709_s30 = sand.u32 1, %s3376_s21  }
 0x5b0   : > { %p3987_p7 = scmp.ne.s32.totalorder %s3979_s12, 0  ;;  %s2710_s29 = scalar_lea.sflag [#allocation5], %s2709_s30 }
 0x5b2   : > { %p3148_p9 = pnand %p3155_p6, %p3987_p7 }
 0x5b4   : > { %3371 = dma.done.wait (!%p3148_p9), %s2710_s29, 128  }
 0x5b5   : > { %3373 = vsyncadd (!%p3148_p9), %s2710_s29, 4294967168  ;;  %s21_s28 = sadd.s32 1, %s3404_s28   ;;  %s3988_s16 = sld [smem:[#allocation12_spill]] }
 0x5b6   : > { %p18_p11 = scmp.ge.s32.totalorder %s21_s28, 6   ;;  %s3989_s23 = sld [smem:[#allocation17_spill]] }
 0x5b7   : > { %s3990_s24 = sld [smem:[#allocation13_spill]]  ;;  %s3991_s25 = sld [smem:[#allocation14_spill]] }
 0x5b8   : > { %s3992_s26 = sld [smem:[#allocation15_spill]]  ;;  %s3993_s27 = sld [smem:[#allocation16_spill]] }
 0x5b9   : > { %s3994_s21 = smov %s3380_s22  ;;  %20 = sbr.rel (!%p18_p11) target bundleno = 7 (0x7), region = 92 }
 0x5bb   : > { %s3995_s22 = smov %s3988_s16 }
 0x5c0   :  { %2715 = vsyncpa [#allocation4], 1 }
 0x5c1   :  { %2717 = vsyncpa [#allocation4 + $0x1], 1 }
 0x5c2   :  { %2718 = vsyncpa [#allocation7], 1 }
 0x5c3   :  { %2719 = vsyncpa [#allocation5], 1 }
 0x5c4   :  { %2721 = vsyncpa [#allocation5 + $0x1], 1 }

</bundles_post_ra>
